<compile_context>
chip_gen: v7x
topology: tpu7x:2x2x1
jax: 0.10.0
libtpu: 0.0.40
codegen_flags: <defaults>
</compile_context>

<pallas_src>
import functools
import math

import jax
import jax.numpy as jnp
from jax import lax
from jax.experimental import pallas as pl
from jax.experimental.pallas import tpu as pltpu

# ----------------------------- configuration --------------------------------
B = 2                 # batch
FMRI_VOXELS = 200     # fmri_voxels
EMBED = 32            # embed_dim
LN_EPS = 1e-5         # torch.nn.LayerNorm default
NORM_EPS = 1e-12      # F.normalize default


def _fs(shape):
    """Full-array BlockSpec for a single-step grid."""
    n = len(shape)
    return pl.BlockSpec(shape, lambda i, n=n: (0,) * n)


def _mxu(x, w_bf16):
    """bf16 MXU operands, f32 accumulation."""
    return jnp.dot(x.astype(jnp.bfloat16), w_bf16,
                   preferred_element_type=jnp.float32)


# ------------------------------ fused kernel ---------------------------------
def _domain_matching_kernel(
        eeg_ref, fmri_ref,
        fe_w1_ref, fe_b1_ref, fe_w2_ref, fe_b2_ref, ln_g_ref, ln_b_ref,
        ea_w1_ref, ea_b1_ref, ea_w2_ref, ea_b2_ref,
        fa_w1_ref, fa_b1_ref, fa_w2_ref, fa_b2_ref,
        temp_ref,
        fmri_lat_ref, al_eeg_ref, al_fmri_ref, loss_ref):
    eeg = eeg_ref[...]                                  # (B, E)  f32
    fmri = fmri_ref[...]                                # (B, V)  f32

    # ---- fmri_encoder: Linear -> ReLU -> Dropout(id, eval) -> Linear -> LayerNorm
    h = _mxu(fmri, fe_w1_ref[...]) + fe_b1_ref[...]     # (B, 2E)
    h = jnp.maximum(h, 0.0)
    z = _mxu(h, fe_w2_ref[...]) + fe_b2_ref[...]        # (B, E)
    mu = jnp.mean(z, axis=-1, keepdims=True)
    var = jnp.mean(jnp.square(z - mu), axis=-1, keepdims=True)
    fmri_latent = (z - mu) * lax.rsqrt(var + LN_EPS) * ln_g_ref[...] + ln_b_ref[...]

    # ---- eeg_aligner: Linear -> ReLU -> Linear
    a = jnp.maximum(_mxu(eeg, ea_w1_ref[...]) + ea_b1_ref[...], 0.0)
    aligned_eeg = _mxu(a, ea_w2_ref[...]) + ea_b2_ref[...]

    # ---- fmri_aligner: Linear -> ReLU -> Linear
    c = jnp.maximum(_mxu(fmri_latent, fa_w1_ref[...]) + fa_b1_ref[...], 0.0)
    aligned_fmri = _mxu(c, fa_w2_ref[...]) + fa_b2_ref[...]

    # ---- contrastive loss (f32 throughout)
    en = aligned_eeg / jnp.maximum(
        jnp.sqrt(jnp.sum(aligned_eeg * aligned_eeg, axis=-1, keepdims=True)), NORM_EPS)
    fn = aligned_fmri / jnp.maximum(
        jnp.sqrt(jnp.sum(aligned_fmri * aligned_fmri, axis=-1, keepdims=True)), NORM_EPS)
    sim = jnp.einsum('id,jd->ij', en, fn,
                     preferred_element_type=jnp.float32) / temp_ref[...]   # (B, B)

    Bq = sim.shape[0]
    rid = lax.broadcasted_iota(jnp.int32, (Bq, Bq), 0)
    cid = lax.broadcasted_iota(jnp.int32, (Bq, Bq), 1)
    diag_mask = rid == cid
    diag_col = jnp.sum(jnp.where(diag_mask, sim, 0.0), axis=-1, keepdims=True)  # (B, 1)
    diag_row = jnp.sum(jnp.where(diag_mask, sim, 0.0), axis=0, keepdims=True)   # (1, B)

    # cross_entropy(sim, arange(B))  -> rows (lane reduce)
    m_r = jnp.max(sim, axis=-1, keepdims=True)
    lse_r = m_r + jnp.log(jnp.sum(jnp.exp(sim - m_r), axis=-1, keepdims=True))
    # cross_entropy(sim.T, arange(B)) -> columns (sublane reduce, no transpose)
    m_c = jnp.max(sim, axis=0, keepdims=True)
    lse_c = m_c + jnp.log(jnp.sum(jnp.exp(sim - m_c), axis=0, keepdims=True))

    loss_e2f = jnp.mean(lse_r - diag_col, keepdims=True)   # (1, 1)
    loss_f2e = jnp.mean(lse_c - diag_row, keepdims=True)   # (1, 1)
    loss = 0.5 * (loss_e2f + loss_f2e)

    fmri_lat_ref[...] = fmri_latent
    al_eeg_ref[...] = aligned_eeg
    al_fmri_ref[...] = aligned_fmri
    loss_ref[...] = loss


# -------------------------------- wrapper ------------------------------------
def domain_matching_forward(params, eeg_latent, target_fmri):
    Bx, E = eeg_latent.shape
    V = target_fmri.shape[1]

    rowf = lambda a: jnp.reshape(a, (1, -1)).astype(jnp.float32)
    bf = lambda w: w.astype(jnp.bfloat16)   # MXU operands -> bf16 (f32 accumulate)

    in_specs = [
        _fs((Bx, E)), _fs((Bx, V)),
        _fs((V, 2 * E)), _fs((1, 2 * E)), _fs((2 * E, E)), _fs((1, E)),
        _fs((1, E)), _fs((1, E)),
        _fs((E, E)), _fs((1, E)), _fs((E, E)), _fs((1, E)),
        _fs((E, E)), _fs((1, E)), _fs((E, E)), _fs((1, E)),
        _fs((1, 1)),
    ]
    out_shapes = (
        jax.ShapeDtypeStruct((Bx, E), jnp.float32),
        jax.ShapeDtypeStruct((Bx, E), jnp.float32),
        jax.ShapeDtypeStruct((Bx, E), jnp.float32),
        jax.ShapeDtypeStruct((1, 1), jnp.float32),
    )
    out_specs = (_fs((Bx, E)), _fs((Bx, E)), _fs((Bx, E)), _fs((1, 1)))

    fmri_latent, aligned_eeg, aligned_fmri, loss = pl.pallas_call(
        _domain_matching_kernel,
        out_shape=out_shapes,
        grid=(1,),
        in_specs=in_specs,
        out_specs=out_specs,
        compiler_params=pltpu.CompilerParams(dimension_semantics=("arbitrary",)),
    )(eeg_latent.astype(jnp.float32), target_fmri.astype(jnp.float32),
      bf(params['fe_w1']), rowf(params['fe_b1']),
      bf(params['fe_w2']), rowf(params['fe_b2']),
      rowf(params['ln_g']), rowf(params['ln_b']),
      bf(params['ea_w1']), rowf(params['ea_b1']),
      bf(params['ea_w2']), rowf(params['ea_b2']),
      bf(params['fa_w1']), rowf(params['fa_b1']),
      bf(params['fa_w2']), rowf(params['fa_b2']),
      jnp.reshape(params['temperature'], (1, 1)).astype(jnp.float32))

    return {'fmri_latent': fmri_latent,
            'aligned_eeg': aligned_eeg,
            'aligned_fmri': aligned_fmri,
            'alignment_loss': loss[0, 0]}


# --------------------------- pure-JAX reference -------------------------------
def _reference_forward(params, eeg_latent, target_fmri):
    """Same math (incl. the bf16 MXU-operand casts) with plain jnp ops."""
    bf = lambda w: w.astype(jnp.bfloat16)
    dot = lambda x, w: jnp.dot(x.astype(jnp.bfloat16), bf(w),
                               preferred_element_type=jnp.float32)
    h = jnp.maximum(dot(target_fmri, params['fe_w1']) + params['fe_b1'], 0.0)
    z = dot(h, params['fe_w2']) + params['fe_b2']
    mu = jnp.mean(z, -1, keepdims=True)
    var = jnp.mean(jnp.square(z - mu), -1, keepdims=True)
    fmri_latent = (z - mu) / jnp.sqrt(var + LN_EPS) * params['ln_g'] + params['ln_b']
    a = jnp.maximum(dot(eeg_latent, params['ea_w1']) + params['ea_b1'], 0.0)
    aligned_eeg = dot(a, params['ea_w2']) + params['ea_b2']
    c = jnp.maximum(dot(fmri_latent, params['fa_w1']) + params['fa_b1'], 0.0)
    aligned_fmri = dot(c, params['fa_w2']) + params['fa_b2']
    en = aligned_eeg / jnp.maximum(jnp.linalg.norm(aligned_eeg, axis=1, keepdims=True), NORM_EPS)
    fn = aligned_fmri / jnp.maximum(jnp.linalg.norm(aligned_fmri, axis=1, keepdims=True), NORM_EPS)
    sim = (en @ fn.T) / params['temperature']
    lbl = jnp.arange(sim.shape[0])
    ce = lambda s: jnp.mean(jax.nn.logsumexp(s, axis=1) - s[lbl, lbl])
    loss = 0.5 * (ce(sim) + ce(sim.T))
    return {'fmri_latent': fmri_latent, 'aligned_eeg': aligned_eeg,
            'aligned_fmri': aligned_fmri, 'alignment_loss': loss}


# ------------------------------ parameter init --------------------------------
def init_params(key):
    def lin(k, fin, fout):
        kw, kb = jax.random.split(k)
        bound = 1.0 / math.sqrt(fin)
        w = jax.random.uniform(kw, (fin, fout), jnp.float32, -bound, bound)
        b = jax.random.uniform(kb, (fout,), jnp.float32, -bound, bound)
        return w, b

    E, V = EMBED, FMRI_VOXELS
    ks = jax.random.split(key, 6)
    fe_w1, fe_b1 = lin(ks[0], V, 2 * E)
    fe_w2, fe_b2 = lin(ks[1], 2 * E, E)
    ea_w1, ea_b1 = lin(ks[2], E, E)
    ea_w2, ea_b2 = lin(ks[3], E, E)
    fa_w1, fa_b1 = lin(ks[4], E, E)
    fa_w2, fa_b2 = lin(ks[5], E, E)
    return dict(fe_w1=fe_w1, fe_b1=fe_b1, fe_w2=fe_w2, fe_b2=fe_b2,
                ln_g=jnp.ones(E, jnp.float32), ln_b=jnp.zeros(E, jnp.float32),
                ea_w1=ea_w1, ea_b1=ea_b1, ea_w2=ea_w2, ea_b2=ea_b2,
                fa_w1=fa_w1, fa_b1=fa_b1, fa_w2=fa_w2, fa_b2=fa_b2,
                temperature=jnp.asarray(0.07, jnp.float32))


# ----------------------------------- main --------------------------------------
if __name__ == "__main__":
    key = jax.random.PRNGKey(0)
    k_param, k_eeg, k_fmri = jax.random.split(key, 3)
    params = init_params(k_param)
    eeg_latent = jax.random.normal(k_eeg, (B, EMBED), jnp.float32)
    target_fmri = jax.random.normal(k_fmri, (B, FMRI_VOXELS), jnp.float32)

    fwd = jax.jit(domain_matching_forward)
    out = fwd(params, eeg_latent, target_fmri)
    jax.block_until_ready(out)

    # shape checks
    assert out['fmri_latent'].shape == (B, EMBED)
    assert out['aligned_eeg'].shape == (B, EMBED)
    assert out['aligned_fmri'].shape == (B, EMBED)
    assert out['alignment_loss'].shape == ()
    assert bool(jnp.isfinite(out['alignment_loss']))

    # numerical check vs. pure-JAX reference (matched bf16 matmul precision)
    ref = jax.jit(_reference_forward)(params, eeg_latent, target_fmri)
    jax.block_until_ready(ref)
    for name in ('fmri_latent', 'aligned_eeg', 'aligned_fmri', 'alignment_loss'):
        assert bool(jnp.allclose(out[name], ref[name], rtol=5e-2, atol=5e-2)), name

    print("KERNEL_OK")
</pallas_src>

<mosaic_0001>
module attributes {stable_mosaic.version = 11 : i64} {
  func.func @_domain_matching_kernel(%arg0: i32, %arg1: memref<2x32xf32, #tpu.memory_space<vmem>>, %arg2: memref<2x200xf32, #tpu.memory_space<vmem>>, %arg3: memref<200x64xbf16, #tpu.memory_space<vmem>>, %arg4: memref<1x64xf32, #tpu.memory_space<vmem>>, %arg5: memref<64x32xbf16, #tpu.memory_space<vmem>>, %arg6: memref<1x32xf32, #tpu.memory_space<vmem>>, %arg7: memref<1x32xf32, #tpu.memory_space<vmem>>, %arg8: memref<1x32xf32, #tpu.memory_space<vmem>>, %arg9: memref<32x32xbf16, #tpu.memory_space<vmem>>, %arg10: memref<1x32xf32, #tpu.memory_space<vmem>>, %arg11: memref<32x32xbf16, #tpu.memory_space<vmem>>, %arg12: memref<1x32xf32, #tpu.memory_space<vmem>>, %arg13: memref<32x32xbf16, #tpu.memory_space<vmem>>, %arg14: memref<1x32xf32, #tpu.memory_space<vmem>>, %arg15: memref<32x32xbf16, #tpu.memory_space<vmem>>, %arg16: memref<1x32xf32, #tpu.memory_space<vmem>>, %arg17: memref<1x1xf32, #tpu.memory_space<vmem>>, %arg18: memref<2x32xf32, #tpu.memory_space<vmem>>, %arg19: memref<2x32xf32, #tpu.memory_space<vmem>>, %arg20: memref<2x32xf32, #tpu.memory_space<vmem>>, %arg21: memref<1x1xf32, #tpu.memory_space<vmem>>) attributes {dimension_semantics = [#tpu.dimension_semantics<arbitrary>], iteration_bounds = array<i64: 1>, scalar_prefetch = 0 : i64, scratch_operands = 0 : i64, tpu.core_type = #tpu.core_type<tc>, window_params = [{pipeline_mode = #tpu.pipeline_mode<synchronous>, transform_indices = @transform_0, window_bounds = array<i64: 2, 32>}, {pipeline_mode = #tpu.pipeline_mode<synchronous>, transform_indices = @transform_1, window_bounds = array<i64: 2, 200>}, {pipeline_mode = #tpu.pipeline_mode<synchronous>, transform_indices = @transform_2, window_bounds = array<i64: 200, 64>}, {pipeline_mode = #tpu.pipeline_mode<synchronous>, transform_indices = @transform_3, window_bounds = array<i64: 1, 64>}, {pipeline_mode = #tpu.pipeline_mode<synchronous>, transform_indices = @transform_4, window_bounds = array<i64: 64, 32>}, {pipeline_mode = #tpu.pipeline_mode<synchronous>, transform_indices = @transform_5, window_bounds = array<i64: 1, 32>}, {pipeline_mode = #tpu.pipeline_mode<synchronous>, transform_indices = @transform_6, window_bounds = array<i64: 1, 32>}, {pipeline_mode = #tpu.pipeline_mode<synchronous>, transform_indices = @transform_7, window_bounds = array<i64: 1, 32>}, {pipeline_mode = #tpu.pipeline_mode<synchronous>, transform_indices = @transform_8, window_bounds = array<i64: 32, 32>}, {pipeline_mode = #tpu.pipeline_mode<synchronous>, transform_indices = @transform_9, window_bounds = array<i64: 1, 32>}, {pipeline_mode = #tpu.pipeline_mode<synchronous>, transform_indices = @transform_10, window_bounds = array<i64: 32, 32>}, {pipeline_mode = #tpu.pipeline_mode<synchronous>, transform_indices = @transform_11, window_bounds = array<i64: 1, 32>}, {pipeline_mode = #tpu.pipeline_mode<synchronous>, transform_indices = @transform_12, window_bounds = array<i64: 32, 32>}, {pipeline_mode = #tpu.pipeline_mode<synchronous>, transform_indices = @transform_13, window_bounds = array<i64: 1, 32>}, {pipeline_mode = #tpu.pipeline_mode<synchronous>, transform_indices = @transform_14, window_bounds = array<i64: 32, 32>}, {pipeline_mode = #tpu.pipeline_mode<synchronous>, transform_indices = @transform_15, window_bounds = array<i64: 1, 32>}, {pipeline_mode = #tpu.pipeline_mode<synchronous>, transform_indices = @transform_16, window_bounds = array<i64: 1, 1>}, {pipeline_mode = #tpu.pipeline_mode<synchronous>, transform_indices = @transform_17, window_bounds = array<i64: 2, 32>}, {pipeline_mode = #tpu.pipeline_mode<synchronous>, transform_indices = @transform_18, window_bounds = array<i64: 2, 32>}, {pipeline_mode = #tpu.pipeline_mode<synchronous>, transform_indices = @transform_19, window_bounds = array<i64: 2, 32>}, {pipeline_mode = #tpu.pipeline_mode<synchronous>, transform_indices = @transform_20, window_bounds = array<i64: 1, 1>}]} {
    %c0 = arith.constant 0 : index
    %c0_0 = arith.constant 0 : index
    %0 = vector.load %arg1[%c0, %c0_0] : memref<2x32xf32, #tpu.memory_space<vmem>>, vector<2x32xf32>
    %c0_1 = arith.constant 0 : index
    %c0_2 = arith.constant 0 : index
    %1 = vector.load %arg2[%c0_1, %c0_2] : memref<2x200xf32, #tpu.memory_space<vmem>>, vector<2x200xf32>
    %c0_3 = arith.constant 0 : index
    %c0_4 = arith.constant 0 : index
    %2 = vector.load %arg3[%c0_3, %c0_4] : memref<200x64xbf16, #tpu.memory_space<vmem>>, vector<200x64xbf16>
    %3 = arith.truncf %1 : vector<2x200xf32> to vector<2x200xbf16>
    %cst = arith.constant dense<0.000000e+00> : vector<2x64xf32>
    %4 = tpu.matmul %3, %2, %cst {dimension_numbers = #tpu.dot_dimension_numbers<[1], [0], [0], [1], [0, 0, 1, 1], [], []>} : vector<2x200xbf16>, vector<200x64xbf16>, vector<2x64xf32> -> vector<2x64xf32>
    %c0_5 = arith.constant 0 : index
    %c0_6 = arith.constant 0 : index
    %5 = vector.load %arg4[%c0_5, %c0_6] : memref<1x64xf32, #tpu.memory_space<vmem>>, vector<1x64xf32>
    %6 = vector.broadcast %5 : vector<1x64xf32> to vector<2x64xf32>
    %7 = arith.addf %4, %6 : vector<2x64xf32>
    %cst_7 = arith.constant 0.000000e+00 : f32
    %8 = vector.broadcast %cst_7 : f32 to vector<2x64xf32>
    %9 = arith.maximumf %7, %8 : vector<2x64xf32>
    %c0_8 = arith.constant 0 : index
    %c0_9 = arith.constant 0 : index
    %10 = vector.load %arg5[%c0_8, %c0_9] : memref<64x32xbf16, #tpu.memory_space<vmem>>, vector<64x32xbf16>
    %11 = arith.truncf %9 : vector<2x64xf32> to vector<2x64xbf16>
    %cst_10 = arith.constant dense<0.000000e+00> : vector<2x32xf32>
    %12 = tpu.matmul %11, %10, %cst_10 {dimension_numbers = #tpu.dot_dimension_numbers<[1], [0], [0], [1], [0, 0, 1, 1], [], []>} : vector<2x64xbf16>, vector<64x32xbf16>, vector<2x32xf32> -> vector<2x32xf32>
    %c0_11 = arith.constant 0 : index
    %c0_12 = arith.constant 0 : index
    %13 = vector.load %arg6[%c0_11, %c0_12] : memref<1x32xf32, #tpu.memory_space<vmem>>, vector<1x32xf32>
    %14 = vector.broadcast %13 : vector<1x32xf32> to vector<2x32xf32>
    %15 = arith.addf %12, %14 : vector<2x32xf32>
    %cst_13 = arith.constant dense<0.000000e+00> : vector<2xf32>
    %16 = vector.multi_reduction <add>, %15, %cst_13 [1] : vector<2x32xf32> to vector<2xf32>
    %17 = vector.shape_cast %16 : vector<2xf32> to vector<2x1xf32>
    %cst_14 = arith.constant 3.200000e+01 : f32
    %18 = vector.broadcast %cst_14 : f32 to vector<2x1xf32>
    %19 = arith.divf %17, %18 : vector<2x1xf32>
    %20 = vector.broadcast %19 : vector<2x1xf32> to vector<2x32xf32>
    %21 = arith.subf %15, %20 : vector<2x32xf32>
    %22 = arith.mulf %21, %21 : vector<2x32xf32>
    %cst_15 = arith.constant dense<0.000000e+00> : vector<2xf32>
    %23 = vector.multi_reduction <add>, %22, %cst_15 [1] : vector<2x32xf32> to vector<2xf32>
    %24 = vector.shape_cast %23 : vector<2xf32> to vector<2x1xf32>
    %cst_16 = arith.constant 3.200000e+01 : f32
    %25 = vector.broadcast %cst_16 : f32 to vector<2x1xf32>
    %26 = arith.divf %24, %25 : vector<2x1xf32>
    %27 = vector.broadcast %19 : vector<2x1xf32> to vector<2x32xf32>
    %28 = arith.subf %15, %27 : vector<2x32xf32>
    %cst_17 = arith.constant 9.99999974E-6 : f32
    %29 = vector.broadcast %cst_17 : f32 to vector<2x1xf32>
    %30 = arith.addf %26, %29 : vector<2x1xf32>
    %31 = math.rsqrt %30 : vector<2x1xf32>
    %32 = vector.broadcast %31 : vector<2x1xf32> to vector<2x32xf32>
    %33 = arith.mulf %28, %32 : vector<2x32xf32>
    %c0_18 = arith.constant 0 : index
    %c0_19 = arith.constant 0 : index
    %34 = vector.load %arg7[%c0_18, %c0_19] : memref<1x32xf32, #tpu.memory_space<vmem>>, vector<1x32xf32>
    %35 = vector.broadcast %34 : vector<1x32xf32> to vector<2x32xf32>
    %36 = arith.mulf %33, %35 : vector<2x32xf32>
    %c0_20 = arith.constant 0 : index
    %c0_21 = arith.constant 0 : index
    %37 = vector.load %arg8[%c0_20, %c0_21] : memref<1x32xf32, #tpu.memory_space<vmem>>, vector<1x32xf32>
    %38 = vector.broadcast %37 : vector<1x32xf32> to vector<2x32xf32>
    %39 = arith.addf %36, %38 : vector<2x32xf32>
    %c0_22 = arith.constant 0 : index
    %c0_23 = arith.constant 0 : index
    %40 = vector.load %arg9[%c0_22, %c0_23] : memref<32x32xbf16, #tpu.memory_space<vmem>>, vector<32x32xbf16>
    %41 = arith.truncf %0 : vector<2x32xf32> to vector<2x32xbf16>
    %cst_24 = arith.constant dense<0.000000e+00> : vector<2x32xf32>
    %42 = tpu.matmul %41, %40, %cst_24 {dimension_numbers = #tpu.dot_dimension_numbers<[1], [0], [0], [1], [0, 0, 1, 1], [], []>} : vector<2x32xbf16>, vector<32x32xbf16>, vector<2x32xf32> -> vector<2x32xf32>
    %c0_25 = arith.constant 0 : index
    %c0_26 = arith.constant 0 : index
    %43 = vector.load %arg10[%c0_25, %c0_26] : memref<1x32xf32, #tpu.memory_space<vmem>>, vector<1x32xf32>
    %44 = vector.broadcast %43 : vector<1x32xf32> to vector<2x32xf32>
    %45 = arith.addf %42, %44 : vector<2x32xf32>
    %cst_27 = arith.constant 0.000000e+00 : f32
    %46 = vector.broadcast %cst_27 : f32 to vector<2x32xf32>
    %47 = arith.maximumf %45, %46 : vector<2x32xf32>
    %c0_28 = arith.constant 0 : index
    %c0_29 = arith.constant 0 : index
    %48 = vector.load %arg11[%c0_28, %c0_29] : memref<32x32xbf16, #tpu.memory_space<vmem>>, vector<32x32xbf16>
    %49 = arith.truncf %47 : vector<2x32xf32> to vector<2x32xbf16>
    %cst_30 = arith.constant dense<0.000000e+00> : vector<2x32xf32>
    %50 = tpu.matmul %49, %48, %cst_30 {dimension_numbers = #tpu.dot_dimension_numbers<[1], [0], [0], [1], [0, 0, 1, 1], [], []>} : vector<2x32xbf16>, vector<32x32xbf16>, vector<2x32xf32> -> vector<2x32xf32>
    %c0_31 = arith.constant 0 : index
    %c0_32 = arith.constant 0 : index
    %51 = vector.load %arg12[%c0_31, %c0_32] : memref<1x32xf32, #tpu.memory_space<vmem>>, vector<1x32xf32>
    %52 = vector.broadcast %51 : vector<1x32xf32> to vector<2x32xf32>
    %53 = arith.addf %50, %52 : vector<2x32xf32>
    %c0_33 = arith.constant 0 : index
    %c0_34 = arith.constant 0 : index
    %54 = vector.load %arg13[%c0_33, %c0_34] : memref<32x32xbf16, #tpu.memory_space<vmem>>, vector<32x32xbf16>
    %55 = arith.truncf %39 : vector<2x32xf32> to vector<2x32xbf16>
    %cst_35 = arith.constant dense<0.000000e+00> : vector<2x32xf32>
    %56 = tpu.matmul %55, %54, %cst_35 {dimension_numbers = #tpu.dot_dimension_numbers<[1], [0], [0], [1], [0, 0, 1, 1], [], []>} : vector<2x32xbf16>, vector<32x32xbf16>, vector<2x32xf32> -> vector<2x32xf32>
    %c0_36 = arith.constant 0 : index
    %c0_37 = arith.constant 0 : index
    %57 = vector.load %arg14[%c0_36, %c0_37] : memref<1x32xf32, #tpu.memory_space<vmem>>, vector<1x32xf32>
    %58 = vector.broadcast %57 : vector<1x32xf32> to vector<2x32xf32>
    %59 = arith.addf %56, %58 : vector<2x32xf32>
    %cst_38 = arith.constant 0.000000e+00 : f32
    %60 = vector.broadcast %cst_38 : f32 to vector<2x32xf32>
    %61 = arith.maximumf %59, %60 : vector<2x32xf32>
    %c0_39 = arith.constant 0 : index
    %c0_40 = arith.constant 0 : index
    %62 = vector.load %arg15[%c0_39, %c0_40] : memref<32x32xbf16, #tpu.memory_space<vmem>>, vector<32x32xbf16>
    %63 = arith.truncf %61 : vector<2x32xf32> to vector<2x32xbf16>
    %cst_41 = arith.constant dense<0.000000e+00> : vector<2x32xf32>
    %64 = tpu.matmul %63, %62, %cst_41 {dimension_numbers = #tpu.dot_dimension_numbers<[1], [0], [0], [1], [0, 0, 1, 1], [], []>} : vector<2x32xbf16>, vector<32x32xbf16>, vector<2x32xf32> -> vector<2x32xf32>
    %c0_42 = arith.constant 0 : index
    %c0_43 = arith.constant 0 : index
    %65 = vector.load %arg16[%c0_42, %c0_43] : memref<1x32xf32, #tpu.memory_space<vmem>>, vector<1x32xf32>
    %66 = vector.broadcast %65 : vector<1x32xf32> to vector<2x32xf32>
    %67 = arith.addf %64, %66 : vector<2x32xf32>
    %68 = arith.mulf %53, %53 : vector<2x32xf32>
    %cst_44 = arith.constant dense<0.000000e+00> : vector<2xf32>
    %69 = vector.multi_reduction <add>, %68, %cst_44 [1] : vector<2x32xf32> to vector<2xf32>
    %70 = vector.shape_cast %69 : vector<2xf32> to vector<2x1xf32>
    %71 = math.sqrt %70 : vector<2x1xf32>
    %cst_45 = arith.constant 9.99999996E-13 : f32
    %72 = vector.broadcast %cst_45 : f32 to vector<2x1xf32>
    %73 = arith.maximumf %71, %72 : vector<2x1xf32>
    %74 = vector.broadcast %73 : vector<2x1xf32> to vector<2x32xf32>
    %75 = arith.divf %53, %74 : vector<2x32xf32>
    %76 = arith.mulf %67, %67 : vector<2x32xf32>
    %cst_46 = arith.constant dense<0.000000e+00> : vector<2xf32>
    %77 = vector.multi_reduction <add>, %76, %cst_46 [1] : vector<2x32xf32> to vector<2xf32>
    %78 = vector.shape_cast %77 : vector<2xf32> to vector<2x1xf32>
    %79 = math.sqrt %78 : vector<2x1xf32>
    %cst_47 = arith.constant 9.99999996E-13 : f32
    %80 = vector.broadcast %cst_47 : f32 to vector<2x1xf32>
    %81 = arith.maximumf %79, %80 : vector<2x1xf32>
    %82 = vector.broadcast %81 : vector<2x1xf32> to vector<2x32xf32>
    %83 = arith.divf %67, %82 : vector<2x32xf32>
    "tpu.trace_start"() <{level = 10 : i32, message = "id,jd->ij"}> : () -> ()
    %cst_48 = arith.constant dense<0.000000e+00> : vector<2x2xf32>
    %84 = tpu.matmul %75, %83, %cst_48 {dimension_numbers = #tpu.dot_dimension_numbers<[1], [1], [0], [0], [0, 0, 1, 0], [], []>} : vector<2x32xf32>, vector<2x32xf32>, vector<2x2xf32> -> vector<2x2xf32>
    "tpu.trace_stop"() : () -> ()
    %c0_49 = arith.constant 0 : index
    %c0_50 = arith.constant 0 : index
    %85 = vector.load %arg17[%c0_49, %c0_50] : memref<1x1xf32, #tpu.memory_space<vmem>>, vector<1x1xf32>
    %86 = vector.broadcast %85 : vector<1x1xf32> to vector<2x2xf32>
    %87 = arith.divf %84, %86 : vector<2x2xf32>
    %88 = tpu.iota {dimensions = array<i32: 0>} : vector<2x2xi32>
    %89 = tpu.iota {dimensions = array<i32: 1>} : vector<2x2xi32>
    %90 = arith.cmpi eq, %88, %89 : vector<2x2xi32>
    %cst_51 = arith.constant 0.000000e+00 : f32
    %91 = vector.broadcast %cst_51 : f32 to vector<2x2xf32>
    %92 = arith.select %90, %87, %91 : vector<2x2xi1>, vector<2x2xf32>
    %cst_52 = arith.constant dense<0.000000e+00> : vector<2xf32>
    %93 = vector.multi_reduction <add>, %92, %cst_52 [1] : vector<2x2xf32> to vector<2xf32>
    %94 = vector.shape_cast %93 : vector<2xf32> to vector<2x1xf32>
    %cst_53 = arith.constant 0.000000e+00 : f32
    %95 = vector.broadcast %cst_53 : f32 to vector<2x2xf32>
    %96 = arith.select %90, %87, %95 : vector<2x2xi1>, vector<2x2xf32>
    %cst_54 = arith.constant dense<0.000000e+00> : vector<2xf32>
    %97 = vector.multi_reduction <add>, %96, %cst_54 [0] : vector<2x2xf32> to vector<2xf32>
    %98 = vector.shape_cast %97 : vector<2xf32> to vector<1x2xf32>
    %cst_55 = arith.constant dense<0xFF800000> : vector<2xf32>
    %99 = vector.multi_reduction <maximumf>, %87, %cst_55 [1] : vector<2x2xf32> to vector<2xf32>
    %100 = vector.shape_cast %99 : vector<2xf32> to vector<2x1xf32>
    %101 = vector.broadcast %100 : vector<2x1xf32> to vector<2x2xf32>
    %102 = arith.subf %87, %101 : vector<2x2xf32>
    %103 = math.exp %102 : vector<2x2xf32>
    %cst_56 = arith.constant dense<0.000000e+00> : vector<2xf32>
    %104 = vector.multi_reduction <add>, %103, %cst_56 [1] : vector<2x2xf32> to vector<2xf32>
    %105 = vector.shape_cast %104 : vector<2xf32> to vector<2x1xf32>
    %106 = math.log %105 : vector<2x1xf32>
    %107 = arith.addf %100, %106 : vector<2x1xf32>
    %cst_57 = arith.constant dense<0xFF800000> : vector<2xf32>
    %108 = vector.multi_reduction <maximumf>, %87, %cst_57 [0] : vector<2x2xf32> to vector<2xf32>
    %109 = vector.shape_cast %108 : vector<2xf32> to vector<1x2xf32>
    %110 = vector.broadcast %109 : vector<1x2xf32> to vector<2x2xf32>
    %111 = arith.subf %87, %110 : vector<2x2xf32>
    %112 = math.exp %111 : vector<2x2xf32>
    %cst_58 = arith.constant dense<0.000000e+00> : vector<2xf32>
    %113 = vector.multi_reduction <add>, %112, %cst_58 [0] : vector<2x2xf32> to vector<2xf32>
    %114 = vector.shape_cast %113 : vector<2xf32> to vector<1x2xf32>
    %115 = math.log %114 : vector<1x2xf32>
    %116 = arith.addf %109, %115 : vector<1x2xf32>
    %117 = arith.subf %107, %94 : vector<2x1xf32>
    %118 = vector.shape_cast %117 : vector<2x1xf32> to vector<1x2x1xf32>
    %cst_59 = arith.constant dense<0.000000e+00> : vector<1xf32>
    %119 = vector.multi_reduction <add>, %118, %cst_59 [1, 2] : vector<1x2x1xf32> to vector<1xf32>
    %120 = vector.shape_cast %119 : vector<1xf32> to vector<1x1x1xf32>
    %121 = vector.extract %120[0, 0, 0] : f32 from vector<1x1x1xf32>
    %122 = vector.broadcast %121 : f32 to vector<1x1xf32>
    %cst_60 = arith.constant 2.000000e+00 : f32
    %123 = vector.broadcast %cst_60 : f32 to vector<1x1xf32>
    %124 = arith.divf %122, %123 : vector<1x1xf32>
    %125 = arith.subf %116, %98 : vector<1x2xf32>
    %126 = vector.shape_cast %125 : vector<1x2xf32> to vector<1x1x2xf32>
    %cst_61 = arith.constant dense<0.000000e+00> : vector<1xf32>
    %127 = vector.multi_reduction <add>, %126, %cst_61 [1, 2] : vector<1x1x2xf32> to vector<1xf32>
    %128 = vector.shape_cast %127 : vector<1xf32> to vector<1x1x1xf32>
    %129 = vector.extract %128[0, 0, 0] : f32 from vector<1x1x1xf32>
    %130 = vector.broadcast %129 : f32 to vector<1x1xf32>
    %cst_62 = arith.constant 2.000000e+00 : f32
    %131 = vector.broadcast %cst_62 : f32 to vector<1x1xf32>
    %132 = arith.divf %130, %131 : vector<1x1xf32>
    %133 = arith.addf %124, %132 : vector<1x1xf32>
    %cst_63 = arith.constant 5.000000e-01 : f32
    %134 = vector.broadcast %cst_63 : f32 to vector<1x1xf32>
    %135 = arith.mulf %134, %133 : vector<1x1xf32>
    %c0_64 = arith.constant 0 : index
    %c0_65 = arith.constant 0 : index
    %136 = vector.load %arg18[%c0_64, %c0_65] : memref<2x32xf32, #tpu.memory_space<vmem>>, vector<2x32xf32>
    tpu.vector_store %arg18[%c0_64, %c0_65], %39 {strides = array<i32>} : memref<2x32xf32, #tpu.memory_space<vmem>>, vector<2x32xf32>,
    %c0_66 = arith.constant 0 : index
    %c0_67 = arith.constant 0 : index
    %137 = vector.load %arg19[%c0_66, %c0_67] : memref<2x32xf32, #tpu.memory_space<vmem>>, vector<2x32xf32>
    tpu.vector_store %arg19[%c0_66, %c0_67], %53 {strides = array<i32>} : memref<2x32xf32, #tpu.memory_space<vmem>>, vector<2x32xf32>,
    %c0_68 = arith.constant 0 : index
    %c0_69 = arith.constant 0 : index
    %138 = vector.load %arg20[%c0_68, %c0_69] : memref<2x32xf32, #tpu.memory_space<vmem>>, vector<2x32xf32>
    tpu.vector_store %arg20[%c0_68, %c0_69], %67 {strides = array<i32>} : memref<2x32xf32, #tpu.memory_space<vmem>>, vector<2x32xf32>,
    %c0_70 = arith.constant 0 : index
    %c0_71 = arith.constant 0 : index
    %139 = vector.load %arg21[%c0_70, %c0_71] : memref<1x1xf32, #tpu.memory_space<vmem>>, vector<1x1xf32>
    tpu.vector_store %arg21[%c0_70, %c0_71], %135 {strides = array<i32>} : memref<1x1xf32, #tpu.memory_space<vmem>>, vector<1x1xf32>,
    return
  }
  func.func @transform_0(%arg0: i32) -> (i32, i32) {
    %c0_i32 = arith.constant 0 : i32
    %c0_i32_0 = arith.constant 0 : i32
    %c0_i32_1 = arith.constant 0 : i32
    return %c0_i32, %c0_i32_0 : i32, i32
  }
  func.func @transform_1(%arg0: i32) -> (i32, i32) {
    %c0_i32 = arith.constant 0 : i32
    %c0_i32_0 = arith.constant 0 : i32
    %c0_i32_1 = arith.constant 0 : i32
    return %c0_i32, %c0_i32_0 : i32, i32
  }
  func.func @transform_2(%arg0: i32) -> (i32, i32) {
    %c0_i32 = arith.constant 0 : i32
    %c0_i32_0 = arith.constant 0 : i32
    %c0_i32_1 = arith.constant 0 : i32
    return %c0_i32, %c0_i32_0 : i32, i32
  }
  func.func @transform_3(%arg0: i32) -> (i32, i32) {
    %c0_i32 = arith.constant 0 : i32
    %c0_i32_0 = arith.constant 0 : i32
    %c0_i32_1 = arith.constant 0 : i32
    return %c0_i32, %c0_i32_0 : i32, i32
  }
  func.func @transform_4(%arg0: i32) -> (i32, i32) {
    %c0_i32 = arith.constant 0 : i32
    %c0_i32_0 = arith.constant 0 : i32
    %c0_i32_1 = arith.constant 0 : i32
    return %c0_i32, %c0_i32_0 : i32, i32
  }
  func.func @transform_5(%arg0: i32) -> (i32, i32) {
    %c0_i32 = arith.constant 0 : i32
    %c0_i32_0 = arith.constant 0 : i32
    %c0_i32_1 = arith.constant 0 : i32
    return %c0_i32, %c0_i32_0 : i32, i32
  }
  func.func @transform_6(%arg0: i32) -> (i32, i32) {
    %c0_i32 = arith.constant 0 : i32
    %c0_i32_0 = arith.constant 0 : i32
    %c0_i32_1 = arith.constant 0 : i32
    return %c0_i32, %c0_i32_0 : i32, i32
  }
  func.func @transform_7(%arg0: i32) -> (i32, i32) {
    %c0_i32 = arith.constant 0 : i32
    %c0_i32_0 = arith.constant 0 : i32
    %c0_i32_1 = arith.constant 0 : i32
    return %c0_i32, %c0_i32_0 : i32, i32
  }
  func.func @transform_8(%arg0: i32) -> (i32, i32) {
    %c0_i32 = arith.constant 0 : i32
    %c0_i32_0 = arith.constant 0 : i32
    %c0_i32_1 = arith.constant 0 : i32
    return %c0_i32, %c0_i32_0 : i32, i32
  }
  func.func @transform_9(%arg0: i32) -> (i32, i32) {
    %c0_i32 = arith.constant 0 : i32
    %c0_i32_0 = arith.constant 0 : i32
    %c0_i32_1 = arith.constant 0 : i32
    return %c0_i32, %c0_i32_0 : i32, i32
  }
  func.func @transform_10(%arg0: i32) -> (i32, i32) {
    %c0_i32 = arith.constant 0 : i32
    %c0_i32_0 = arith.constant 0 : i32
    %c0_i32_1 = arith.constant 0 : i32
    return %c0_i32, %c0_i32_0 : i32, i32
  }
  func.func @transform_11(%arg0: i32) -> (i32, i32) {
    %c0_i32 = arith.constant 0 : i32
    %c0_i32_0 = arith.constant 0 : i32
    %c0_i32_1 = arith.constant 0 : i32
    return %c0_i32, %c0_i32_0 : i32, i32
  }
  func.func @transform_12(%arg0: i32) -> (i32, i32) {
    %c0_i32 = arith.constant 0 : i32
    %c0_i32_0 = arith.constant 0 : i32
    %c0_i32_1 = arith.constant 0 : i32
    return %c0_i32, %c0_i32_0 : i32, i32
  }
  func.func @transform_13(%arg0: i32) -> (i32, i32) {
    %c0_i32 = arith.constant 0 : i32
    %c0_i32_0 = arith.constant 0 : i32
    %c0_i32_1 = arith.constant 0 : i32
    return %c0_i32, %c0_i32_0 : i32, i32
  }
  func.func @transform_14(%arg0: i32) -> (i32, i32) {
    %c0_i32 = arith.constant 0 : i32
    %c0_i32_0 = arith.constant 0 : i32
    %c0_i32_1 = arith.constant 0 : i32
    return %c0_i32, %c0_i32_0 : i32, i32
  }
  func.func @transform_15(%arg0: i32) -> (i32, i32) {
    %c0_i32 = arith.constant 0 : i32
    %c0_i32_0 = arith.constant 0 : i32
    %c0_i32_1 = arith.constant 0 : i32
    return %c0_i32, %c0_i32_0 : i32, i32
  }
  func.func @transform_16(%arg0: i32) -> (i32, i32) {
    %c0_i32 = arith.constant 0 : i32
    %c0_i32_0 = arith.constant 0 : i32
    %c0_i32_1 = arith.constant 0 : i32
    return %c0_i32, %c0_i32_0 : i32, i32
  }
  func.func @transform_17(%arg0: i32) -> (i32, i32) {
    %c0_i32 = arith.constant 0 : i32
    %c0_i32_0 = arith.constant 0 : i32
    %c0_i32_1 = arith.constant 0 : i32
    return %c0_i32, %c0_i32_0 : i32, i32
  }
  func.func @transform_18(%arg0: i32) -> (i32, i32) {
    %c0_i32 = arith.constant 0 : i32
    %c0_i32_0 = arith.constant 0 : i32
    %c0_i32_1 = arith.constant 0 : i32
    return %c0_i32, %c0_i32_0 : i32, i32
  }
  func.func @transform_19(%arg0: i32) -> (i32, i32) {
    %c0_i32 = arith.constant 0 : i32
    %c0_i32_0 = arith.constant 0 : i32
    %c0_i32_1 = arith.constant 0 : i32
    return %c0_i32, %c0_i32_0 : i32, i32
  }
  func.func @transform_20(%arg0: i32) -> (i32, i32) {
    %c0_i32 = arith.constant 0 : i32
    %c0_i32_0 = arith.constant 0 : i32
    %c0_i32_1 = arith.constant 0 : i32
    return %c0_i32, %c0_i32_0 : i32, i32
  }
}

</mosaic_0001>

<bundles_post_ra>
// kernel: domain_matching_forward.1
= control target key start
LH: loop header
LB: loop body
LE: loop exit
PB: predicated region body
PF: predicated region fallthrough
CT: control target
= control target key end

     0   :  { %s1449_s0 = inlined_call_operand.vmem [shape: f32[2,32], index: 0, kind: input, shape index: {}]   ;;  %s1450_s1 = inlined_call_operand.vmem [shape: f32[2,200], index: 1, kind: input, shape index: {}]   ;;  %s1451_s2 = inlined_call_operand.vmem [shape: bf16[200,64], index: 2, kind: input, shape index: {}]   ;;  %s1452_s3 = inlined_call_operand.vmem [shape: f32[1,64], index: 3, kind: input, shape index: {}]   ;;  %s1453_s4 = inlined_call_operand.vmem [shape: bf16[64,32], index: 4, kind: input, shape index: {}]   ;;  %s1454_s5 = inlined_call_operand.vmem [shape: f32[1,32], index: 5, kind: input, shape index: {}]   ;;  %s1455_s6 = inlined_call_operand.vmem [shape: f32[1,32], index: 6, kind: input, shape index: {}]   ;;  %s1456_s7 = inlined_call_operand.vmem [shape: f32[1,32], index: 7, kind: input, shape index: {}]   ;;  %s1457_s8 = inlined_call_operand.vmem [shape: bf16[32,32], index: 8, kind: input, shape index: {}]   ;;  %s1458_s9 = inlined_call_operand.vmem [shape: f32[1,32], index: 9, kind: input, shape index: {}]   ;;  %s1459_s10 = inlined_call_operand.vmem [shape: bf16[32,32], index: 10, kind: input, shape index: {}]   ;;  %s1460_s11 = inlined_call_operand.vmem [shape: f32[1,32], index: 11, kind: input, shape index: {}]   ;;  %s1461_s12 = inlined_call_operand.vmem [shape: bf16[32,32], index: 12, kind: input, shape index: {}]   ;;  %s1462_s13 = inlined_call_operand.vmem [shape: f32[1,32], index: 13, kind: input, shape index: {}]   ;;  %s1463_s14 = inlined_call_operand.vmem [shape: bf16[32,32], index: 14, kind: input, shape index: {}]   ;;  %s1464_s15 = inlined_call_operand.vmem [shape: f32[1,32], index: 15, kind: input, shape index: {}]   ;;  %s1465_s16 = inlined_call_operand.<no memory space> [shape: f32[1,1], index: 16, kind: input, shape index: {}]   ;;  %s1466_s17 = inlined_call_operand.hbm [shape: f32[2,32], index: 17, kind: output, shape index: {0}]   ;;  %s1467_s18 = inlined_call_operand.hbm [shape: f32[2,32], index: 18, kind: output, shape index: {1}]   ;;  %s1468_s19 = inlined_call_operand.hbm [shape: f32[2,32], index: 19, kind: output, shape index: {2}]   ;;  %s1469_s20 = inlined_call_operand.hbm [shape: f32[1,1], index: 20, kind: output, shape index: {3}]  }
   0x1   :  { %1472 = sst [smem:[#allocation13_spill]] %s1449_s0  ;;  %v26_v0 = vstv %s1465_s16 }
   0x2   :  { %1473 = sst [smem:[#allocation14_spill]] %s1450_s1  ;;  %27 = vst [vmem:[#allocation2] sm:$0x1] %v26_v0 }
   0x3   :  { %1474 = sst [smem:[#allocation15_spill]] %s1451_s2 }
   0x4   :  { %1475 = sst [smem:[#allocation16_spill]] %s1452_s3 }
   0x5   :  { %1476 = sst [smem:[#allocation17_spill]] %s1453_s4 }
   0x6   :  { %28 = vsyncpa [#allocation4], 0 }
   0x7   :  { %29 = vsyncpa [#allocation6], 0  ;;  %s1477_s2 = sld [smem:[#allocation15_spill]]  ;;  %v1139_v2 = vmov 0   ;;  %v1140_v4 = vmov 0.0   ;;  %s1478_s21 = sld [smem:[#allocation14_spill]] }
   0x8   :  { %196 = vmatprep.subr.bf16.mxu0 %v1139_v2  ;;  %999 = vset.pattern.permute.xlu0 %v1139_v2  ;;  %s1479_s23 = sld [smem:[#allocation17_spill]]  ;;  %vm188_vm0 = vcmask 588800  }
   0x9   :  { %939 = vmatprep.subr.bf16.mxu1 %v1140_v4 }
   0xd   :  { %v1000_v1 = vld [vmem:[%s1477_s2] sm:$0xff]   ;;  %v1001_v3 = vld [vmem:[%s1477_s2 + $0x8] sm:$0xff]   ;;  %v1002_v5 = vld [vmem:[%s1477_s2 + $0x10] sm:$0xff]  }
   0xe   :  { %197 = vmatpush1.bf16.msra.mxu0 %v1000_v1  ;;  %v1003_v6 = vld [vmem:[%s1477_s2 + $0x18] sm:$0xff]   ;;  %v1004_v7 = vld [vmem:[%s1477_s2 + $0x20] sm:$0xff]   ;;  %v1014_v11 = vld [vmem:[%s1479_s23 + $0x8] sm:$0xff]  }
   0xf   :  { %198 = vmatprep.subr.bf16.mxu0 %v1139_v2  ;;  %v877_v8 = vld.sshfl [vmem:[%s1478_s21] sm:$0x33 pattern:$0x76325410]  ;;  %v1005_v12 = vld [vmem:[%s1477_s2 + $0x28] sm:$0xff]   ;;  %v1006_v14 = vld [vmem:[%s1477_s2 + $0x30] sm:$0xff]  }
  0x10   :  { %v101_v9 = vcombine.high %v877_v8, %v877_v8  ;;  %v1013_v10 = vld [vmem:[%s1479_s23] sm:$0xff]  }
  0x11   :  { %940 = vmatpush3.bf16.msra.mxu1 %v1013_v10 }
  0x12   :  { %199 = vmatpush1.bf16.msra.mxu0 %v1001_v3  ;;  %v105_v13 = vpack.c.bf16 %v101_v9, %v101_v9  ;;  %941 = vmatprep.subr.bf16.mxu1 %v1140_v4 }
  0x13   :  { %200 = vmatprep.subr.bf16.mxu0 %v1139_v2 }
  0x14   :  { %892 = vmatprep.mubr.msk.bf16.mxu0 %vm188_vm0, %v105_v13 }
  0x15   :  { %942 = vmatpush3.bf16.msra.mxu1 %v1014_v11 }
  0x16   :  { %201 = vmatpush1.bf16.msra.mxu0 %v1002_v5  ;;  %943 = vmatprep.subr.bf16.mxu1 %v1140_v4 }
  0x17   :  { %202 = vmatprep.subr.bf16.mxu0 %v1139_v2 }
  0x1a   :  { %203 = vmatpush1.bf16.msra.mxu0 %v1003_v6 }
  0x1b   :  { %204 = vmatprep.subr.bf16.mxu0 %v1139_v2 }
  0x1e   :  { %205 = vmatpush1.bf16.msra.mxu0 %v1004_v7 }
  0x1f   :  { %206 = vmatprep.subr.bf16.mxu0 %v1139_v2 }
  0x22   :  { %207 = vmatpush1.bf16.msra.mxu0 %v1005_v12 }
  0x23   :  { %30 = vsyncpa [#allocation9], 0  ;;  %208 = vmatprep.subr.bf16.mxu0 %v1139_v2  ;;  %v1007_v15 = vld [vmem:[%s1477_s2 + $0x38] sm:$0xff]   ;;  %v1008_v16 = vld [vmem:[%s1477_s2 + $0x40] sm:$0xff]   ;;  %vm192_vm1 = vcmask 1043456   ;;  %v104_v22 = vpack.c.bf16 %v877_v8, %v877_v8  ;;  %vm1141_vm2 = vmmov 0  }
  0x24   :  { %v1009_v17 = vld [vmem:[%s1477_s2 + $0x48] sm:$0xff]   ;;  %v1010_v18 = vld [vmem:[%s1477_s2 + $0x50] sm:$0xff]   ;;  %v1011_v19 = vld [vmem:[%s1477_s2 + $0x58] sm:$0xff]   ;;  %947 = vmatprep.mubr.msk.bf16.mxu1 %vm1141_vm2, %v1140_v4  ;;  %s1480_s30 = sld [smem:[#allocation16_spill]]  ;;  %vm277_vm3 = vcmask 523264   ;;  %s1481_s25 = sld [smem:[#allocation13_spill]] }
  0x25   :  { %v1012_v20 = vld [vmem:[%s1477_s2 + $0x60] ss:$0 sps:$4 sm:$0xff]   ;;  %v1015_v23 = vld [vmem:[%s1479_s23 + $0x10] sm:$0xff]   ;;  %v1016_v24 = vld [vmem:[%s1479_s23 + $0x18] sm:$0xff]   ;;  %vm376_vm4 = vcmask 261120   ;;  %vm321_vm5 = vcmask 254976  }
  0x26   :  { %209 = vmatpush1.bf16.msra.mxu0 %v1006_v14  ;;  %v194_v21 = vsel %vm192_vm1, %v1012_v20, 0  ;;  %944 = vmatpush3.bf16.msra.mxu1 %v1015_v23  ;;  %v1017_v33 = vld [vmem:[%s1457_s8] sm:$0xff]   ;;  %v1018_v34 = vld [vmem:[%s1457_s8 + $0x8] sm:$0xff]   ;;  %vm745_vm10 = vcmask 9216   ;;  %vm787_vm12 = vcmask 1024   ;;  %vm802_vm13 = vcmask 8192  }
  0x27   :  { %210 = vmatprep.subr.bf16.mxu0 %v1139_v2  ;;  %945 = vmatprep.subr.bf16.mxu1 %v1140_v4  ;;  %v893_v37 = vld [vmem:[%s1454_s5] ss:$0 sm:$0xff]  ;;  %v1020_v55 = vld [vmem:[%s1459_s10 + $0x8] sm:$0xff]   ;;  %s1143_s16 = smov [#allocation3]  }
  0x28   :  { %v1019_v49 = vld [vmem:[%s1459_s10] sm:$0xff]   ;;  %v1022_v60 = vld [vmem:[%s1461_s12 + $0x8] sm:$0xff]   ;;  %s828_s8 = sshll.u32 %s1143_s16, 4  ;;  %s829_s8 = int_to_ptr.vmem [resolvable:$true] %s828_s8 }
  0x29   :  { %v901_v50 = vld [vmem:[%s1458_s9] ss:$0 sm:$0xff] }
  0x2a   :  { %211 = vmatpush1.bf16.msra.mxu0 %v1007_v15  ;;  %946 = vmatpush3.bf16.msra.mxu1 %v1016_v24  ;;  %v878_v25 = vld [vmem:[%s1480_s30] ss:$0 sm:$0xff]  ;;  %v1024_v15 = vld [vmem:[%s1463_s14 + $0x8] sm:$0xff]  }
  0x2b   :  { %212 = vmatprep.subr.bf16.mxu0 %v1139_v2  ;;  %951 = vmatprep.subr.bf16.mxu1 %v1140_v4  ;;  %v66_v35 = vld [vmem:[%s1481_s25] sm:$0x3] }
  0x2c   :  { %v356_v36 = vpack.c.bf16 %v66_v35, %v66_v35  ;;  %v1021_v59 = vld [vmem:[%s1461_s12] sm:$0xff]  }
  0x2d   :  { %v899_v1 = vld [vmem:[%s1455_s6] ss:$0 sm:$0xff] }
  0x2e   :  { %213 = vmatpush1.bf16.msra.mxu0 %v1008_v16  ;;  %v900_v3 = vld [vmem:[%s1456_s7] ss:$0 sm:$0xff] }
  0x2f   :  { %214 = vmatprep.subr.bf16.mxu0 %v1139_v2  ;;  %v905_v8 = vld [vmem:[%s1460_s11] ss:$0 sm:$0xff] }
  0x30   :  { %v1023_v14 = vld [vmem:[%s1463_s14] sm:$0xff]  }
  0x31   :  { %v909_v16 = vld [vmem:[%s1462_s13] ss:$0 sm:$0xff]  ;;  %s1142_s13 = smov [#allocation5]  }
  0x32   :  { %215 = vmatpush1.bf16.msra.mxu0 %v1009_v17  ;;  %v913_v24 = vld [vmem:[%s1464_s15] ss:$0 sm:$0xff]  ;;  %s838_s15 = sshll.u32 %s1142_s13, 4  ;;  %s839_s15 = int_to_ptr.vmem [resolvable:$true] %s838_s15 }
  0x33   :  { %216 = vmatprep.subr.bf16.mxu0 %v1139_v2  ;;  %s1045_s26 = scalar_lea.vmem %s839_s15, 32  ;;  %p1050_p1 = scmp.lt.s32.totalorder %s839_s15, %s839_s15 }
  0x34   :  { %p1046_p0 = scmp.ne.s32.totalorder %s839_s15, %s1045_s26  ;;  %p1051_p2 = scmp.lt.s32.totalorder %s1045_s26, %s1045_s26 }
  0x36   :  { %217 = vmatpush1.bf16.msra.mxu0 %v1010_v18  ;;  %p1052_p3 = por %p1051_p2, %p1050_p1 }
  0x37   :  { %218 = vmatprep.subr.bf16.mxu0 %v1139_v2 }
  0x38   :  { %p1053_p4 = pnand %p1052_p3, %p1046_p0 }
  0x3a   :  { %219 = vmatpush1.bf16.msra.mxu0 %v1011_v19 }
  0x3b   :  { %220 = vmatprep.subr.bf16.mxu0 %v1139_v2 }
  0x3e   :  { %221 = vmatpush1.bf16.msra.mxu0 %v194_v21 }
  0x41   :  { %229 = vmatmul.mubr.bf16.vlgmr.msra.gmra.mrb[0].mxu0 %v104_v22 }
 0x114   :  { %v230_v26 = vpop.f32.mrb[0].mxu0 }
 0x115   :  { %v231_v27 = vadd.f32 %v878_v25, %v230_v26  ;;  %v232_v28 = vpop.f32.mrb[1].mxu0 }
 0x116   :  { %v233_v29 = vpop.f32.mrb[2].mxu0 }
 0x117   :  { %v236_v30 = vmax.f32 %v231_v27, 0.0  ;;  %v234_v31 = vpop.f32.mrb[3].mxu0 }
 0x119   :  { %v245_v32 = vpack.c.bf16 %v236_v30, %v236_v30 }
 0x11b   :  { %948 = vmatmul.mubr.msk.bf16.vlgmr.msra.gmra.mrb[0].mxu1 %vm277_vm3, %v245_v32 }
 0x11c   :  { %955 = vmatprep.mubr.msk.bf16.mxu1 %vm1141_vm2, %v1140_v4  ;;  %952 = vmatpush3.bf16.msra.mxu1 %v1017_v33 }
 0x11d   :  { %953 = vmatprep.subr.bf16.mxu1 %v1140_v4 }
 0x120   :  { %954 = vmatpush3.bf16.msra.mxu1 %v1018_v34 }
 0x121   :  { %959 = vmatprep.subr.bf16.mxu1 %v1140_v4 }
 0x123   :  { %956 = vmatmul.mubr.msk.bf16.vlgmr.msra.gmra.mrb[4].mxu1 %vm376_vm4, %v356_v36 }
 0x124   :  { %963 = vmatprep.mubr.msk.bf16.mxu1 %vm1141_vm2, %v1140_v4  ;;  %960 = vmatpush3.bf16.msra.mxu1 %v1019_v49 }
 0x125   :  { %961 = vmatprep.subr.bf16.mxu1 %v1140_v4 }
 0x128   :  { %962 = vmatpush3.bf16.msra.mxu1 %v1020_v55 }
 0x129   :  { %967 = vmatprep.subr.bf16.mxu1 %v1140_v4 }
 0x1ee   :  { %v315_v38 = vpop.f32.mrb[0].mxu1 }
 0x1ef   :  { %v316_v39 = vadd.f32 %v893_v37, %v315_v38  ;;  %v949_v40 = vpop.f32.mrb[1].mxu1 }
 0x1f0   :  { %v318_v41 = vpop.f32.mrb[2].mxu1 }
 0x1f1   :  { %v950_v42 = vpop.f32.mrb[3].mxu1  ;;  %v322_v43 = vsel %vm321_vm5, %v316_v39, 0.0 }
 0x1f2   :  { %323 = vadd.xlane.f32.xlu0 %v322_v43 }
 0x1f6   :  { %v414_v51 = vpop.f32.mrb[4].mxu1 }
 0x1f7   :  { %v415_v52 = vadd.f32 %v901_v50, %v414_v51  ;;  %v957_v53 = vpop.f32.mrb[5].mxu1 }
 0x1f8   :  { %v417_v54 = vpop.f32.mrb[6].mxu1 }
 0x1f9   :  { %v420_v56 = vmax.f32 %v415_v52, 0.0  ;;  %v958_v57 = vpop.f32.mrb[7].mxu1 }
 0x1fb   :  { %v425_v58 = vpack.c.bf16 %v420_v56, %v420_v56 }
 0x1fd   :  { %964 = vmatmul.mubr.msk.bf16.vlgmr.msra.gmra.mrb[8].mxu1 %vm376_vm4, %v425_v58 }
 0x1fe   :  { %971 = vmatprep.mubr.msk.bf16.mxu1 %vm1141_vm2, %v1140_v4  ;;  %968 = vmatpush3.bf16.msra.mxu1 %v1021_v59 }
 0x1ff   :  { %969 = vmatprep.subr.bf16.mxu1 %v1140_v4 }
 0x202   :  { %970 = vmatpush3.bf16.msra.mxu1 %v1022_v60 }
 0x203   :  { %975 = vmatprep.subr.bf16.mxu1 %v1140_v4 }
 0x27f   :  { %v324_v44 = vpop.xlane.xlu0 %323 }
 0x280   :  { %v326_v45 = vmul.f32 0.03125, %v324_v44 }
 0x282   :  { %v327_v46 = vsub.f32 %v316_v39, %v326_v45 }
 0x284   :  { %v328_v47 = vmul.f32 %v327_v46, %v327_v46 }
 0x286   :  { %v329_v48 = vsel %vm321_vm5, %v328_v47, 0.0 }
 0x287   :  { %330 = vadd.xlane.f32.xlu0 %v329_v48 }
 0x2d0   :  { %v482_v9 = vpop.f32.mrb[8].mxu1 }
 0x2d1   :  { %v483_v10 = vadd.f32 %v905_v8, %v482_v9  ;;  %v965_v11 = vpop.f32.mrb[9].mxu1 }
 0x2d2   :  { %v485_v12 = vpop.f32.mrb[10].mxu1 }
 0x2d3   :  { %818 = vst.msk [vmem:[#allocation5] sm:$0x3] %vm321_vm5, %v483_v10  ;;  %v966_v13 = vpop.f32.mrb[11].mxu1  ;;  %v623_v32 = vmul.f32 %v483_v10, %v483_v10 }
 0x2d5   :  { %v624_v33 = vsel %vm321_vm5, %v623_v32, 0.0 }
 0x314   :  { %v331_v61 = vpop.xlane.xlu0 %330 }
 0x315   :  { %v332_v62 = vmul.f32 0.03125, %v331_v61  ;;  %v739_v61 = vlaneseq }
 0x317   :  { %v333_v63 = vadd.f32 1e-05, %v332_v62  ;;  %v740_v62 = vshrl.u32 %v739_v61, 7 }
 0x319   :  { %1025 = vrsqrt.f32 %v333_v63  ;;  %v742_v63 = vand.u32 127, %v739_v61 }
 0x31b   :  { %vm743_vm11 = vcmp.eq.s32.totalorder %v740_v62, %v742_v63 }
 0x323   :  { %v1026_v0 = vpop.eup %1025 }
 0x324   :  { %v335_v2 = vmul.f32 %v1026_v0, %v327_v46 }
 0x326   :  { %v343_v5 = vmul.f32 %v899_v1, %v335_v2 }
 0x328   :  { %v351_v6 = vadd.f32 %v900_v3, %v343_v5 }
 0x32a   :  { %v492_v7 = vpack.c.bf16 %v351_v6, %v351_v6  ;;  %817 = vst.msk [vmem:[#allocation3] sm:$0x3] %vm321_vm5, %v351_v6 }
 0x32c   :  { %972 = vmatmul.mubr.msk.bf16.vlgmr.msra.gmra.mrb[12].mxu1 %vm376_vm4, %v492_v7 }
 0x32d   :  { %979 = vmatprep.mubr.msk.bf16.mxu1 %vm1141_vm2, %v1140_v4  ;;  %976 = vmatpush3.bf16.msra.mxu1 %v1023_v14 }
 0x32e   :  { %977 = vmatprep.subr.bf16.mxu1 %v1140_v4 }
 0x331   :  { %978 = vmatpush3.bf16.msra.mxu1 %v1024_v15 }
 0x332   :  { %983 = vmatprep.subr.mxu1 %v1140_v4 }
 0x3ff   :  { %v549_v17 = vpop.f32.mrb[12].mxu1 }
 0x400   :  { %v550_v18 = vadd.f32 %v909_v16, %v549_v17  ;;  %v973_v19 = vpop.f32.mrb[13].mxu1 }
 0x401   :  { %v552_v20 = vpop.f32.mrb[14].mxu1 }
 0x402   :  { %v555_v21 = vmax.f32 %v550_v18, 0.0  ;;  %v974_v22 = vpop.f32.mrb[15].mxu1 }
 0x404   :  { %v560_v23 = vpack.c.bf16 %v555_v21, %v555_v21 }
 0x406   :  { %980 = vmatmul.mubr.msk.bf16.vlgmr.msra.gmra.mrb[16].mxu1 %vm376_vm4, %v560_v23 }
 0x407   :  { %985 = vmatprep.mubr.msk.f32.mxu1 %vm1141_vm2, %v1140_v4  ;;  %v919_v4 = vld [vmem:[#allocation2] ss:$0 sm:$0xff] }
 0x408   :  { %734 = vperm.xlu0 %999, %v919_v4  }
 0x487   :  { %v735_v52 = vpop.permute.xlu0 %734 }
 0x4d9   :  { %v617_v25 = vpop.f32.mrb[16].mxu1 }
 0x4da   :  { %v618_v26 = vadd.f32 %v913_v24, %v617_v25  ;;  %v981_v27 = vpop.f32.mrb[17].mxu1 }
 0x4db   :  { %v620_v28 = vpop.f32.mrb[18].mxu1 }
 0x4dc   :  { %819 = vst.msk [vmem:[#allocation7] sm:$0x3] %vm321_vm5, %v618_v26  ;;  %v982_v29 = vpop.f32.mrb[19].mxu1  ;;  %v637_v30 = vmul.f32 %v618_v26, %v618_v26 }
 0x4de   :  { %v638_v31 = vsel %vm321_vm5, %v637_v30, 0.0 }
 0x4df   :  { %639 = vadd.xlane.f32.xlu1 %v638_v31 }
 0x4e3   :  { %625 = vadd.xlane.f32.xlu1 %v624_v33 }
 0x56c   :  { %v640_v34 = vpop.xlane.xlu1 %639 }
 0x56d   :  { %1027 = vrsqrt.f32 %v640_v34  ;;  %vm643_vm6 = vcmp.eq.f32.partialorder %v640_v34, inf  ;;  %v646_v38 = vand.u32 2147483648, %v640_v34  ;;  %vm645_vm7 = vcmp.eq.f32.partialorder %v640_v34, 0.0 }
 0x570   :  { %v626_v35 = vpop.xlane.xlu1 %625 }
 0x571   :  { %1029 = vrsqrt.f32 %v626_v35  ;;  %vm629_vm8 = vcmp.eq.f32.partialorder %v626_v35, inf  ;;  %v632_v44 = vand.u32 2147483648, %v626_v35  ;;  %vm631_vm9 = vcmp.eq.f32.partialorder %v626_v35, 0.0 }
 0x577   :  { %v1028_v36 = vpop.eup %1027 }
 0x578   :  { %v642_v37 = vmul.f32 %v1028_v36, %v640_v34 }
 0x57a   :  { %v644_v39 = vsel %vm643_vm6, %v640_v34, %v642_v37 }
 0x57b   :  { %v1030_v40 = vpop.eup %1029  ;;  %v647_v41 = vsel %vm645_vm7, %v646_v38, %v644_v39 }
 0x57c   :  { %v648_v42 = vmax.f32 %v647_v41, 1e-12  ;;  %v628_v43 = vmul.f32 %v1030_v40, %v626_v35 }
 0x57e   :  { %1031 = vrcp.f32 %v648_v42  ;;  %v630_v45 = vsel %vm629_vm8, %v626_v35, %v628_v43 }
 0x57f   :  { %v633_v46 = vsel %vm631_vm9, %v632_v44, %v630_v45 }
 0x580   :  { %v634_v47 = vmax.f32 %v633_v46, 1e-12 }
 0x582   :  { %1033 = vrcp.f32 %v634_v47 }
 0x583   :  { %1035 = vrcp.f32 %v735_v52 }
 0x588   :  { %v1032_v48 = vpop.eup %1031 }
 0x589   :  { %v650_v49 = vmul.f32 %v1032_v48, %v618_v26 }
 0x58b   :  { %984 = vmatpush3.xpose.msk.msra.mxu1 %vm376_vm4, %v650_v49 }
 0x58c   :  { %v1034_v50 = vpop.eup %1033 }
 0x58d   :  { %v636_v51 = vmul.f32 %v1034_v50, %v483_v10  ;;  %v1036_v53 = vpop.eup %1035 }
 0x58f   :  { %986 = vmatmul.mubr.msk.f32.vlgmr.msra.gmra.mrb[20].mxu1 %vm376_vm4, %v636_v51 }
 0x662   :  { %v723_v54 = vpop.f32.mrb[20].mxu1 }
 0x663   :  { %v738_v55 = vmul.f32 %v1036_v53, %v723_v54  ;;  %v987_v56 = vpop.f32.mrb[21].mxu1 }
 0x665   :  { %v755_v57 = vsel %vm745_vm10, %v738_v55, -inf  ;;  %v744_v2 = vsel %vm743_vm11, %v738_v55, 0.0 }
 0x666   :  { %756 = vmax.xlane.f32.xlu1 %v755_v57  ;;  %v746_v3 = vsel %vm745_vm10, %v744_v2, 0.0  ;;  %v767_v5 = vrot.slane %v755_v57, 4 }
 0x667   :  { %v749_v21 = vrot.slane %v746_v3, 4 }
 0x668   :  { %v768_v6 = vmax.f32 %v755_v57, %v767_v5 }
 0x669   :  { %v750_v22 = vadd.f32 %v749_v21, %v746_v3 }
 0x66a   :  { %v769_v7 = vrot.slane %v768_v6, 2 }
 0x66b   :  { %v751_v24 = vrot.slane %v750_v22, 2 }
 0x66c   :  { %v770_v8 = vmax.f32 %v768_v6, %v769_v7 }
 0x66d   :  { %v752_v26 = vadd.f32 %v751_v24, %v750_v22 }
 0x66e   :  { %v771_v9 = vrot.slane %v770_v8, 1 }
 0x66f   :  { %v753_v30 = vrot.slane %v752_v26, 1 }
 0x670   :  { %v772_v10 = vmax.f32 %v770_v8, %v771_v9 }
 0x671   :  { %v754_v34 = vadd.f32 %v753_v30, %v752_v26 }
 0x672   :  { %v773_v11 = vsub.f32 %v738_v55, %v772_v10 }
 0x674   :  { %v774_v12 = vmul.f32 1.442695, %v773_v11 }
 0x6f3   :  { %v757_v58 = vpop.xlane.xlu1 %756 }
 0x6f4   :  { %v758_v59 = vsub.f32 %v738_v55, %v757_v58 }
 0x6f6   :  { %v759_v60 = vmul.f32 1.442695, %v758_v59 }
 0x6f8   :  { %1037 = vpow2.f32 %v759_v60 }
 0x6f9   :  { %1039 = vpow2.f32 %v774_v12 }
 0x702   :  { %v1038_v0 = vpop.eup %1037 }
 0x703   :  { %v761_v1 = vsel %vm745_vm10, %v1038_v0, 0.0  ;;  %v1040_v13 = vpop.eup %1039 }
 0x704   :  { %762 = vadd.xlane.f32.xlu1 %v761_v1  ;;  %v776_v14 = vsel %vm745_vm10, %v1040_v13, 0.0 }
 0x705   :  { %v777_v15 = vrot.slane %v776_v14, 4 }
 0x707   :  { %v778_v16 = vadd.f32 %v777_v15, %v776_v14 }
 0x708   :  { %747 = vadd.xlane.f32.xlu1 %v746_v3 }
 0x709   :  { %v779_v17 = vrot.slane %v778_v16, 2 }
 0x70b   :  { %v780_v18 = vadd.f32 %v779_v17, %v778_v16 }
 0x70d   :  { %v781_v19 = vrot.slane %v780_v18, 1 }
 0x70f   :  { %v782_v20 = vadd.f32 %v781_v19, %v780_v18 }
 0x711   :  { %1041 = vlog2.f32 %v782_v20 }
 0x71b   :  { %v1042_v25 = vpop.eup %1041 }
 0x71c   :  { %v784_v27 = vmul.f32 0.6931472, %v1042_v25 }
 0x71e   :  { %v785_v32 = vadd.f32 %v784_v27, %v772_v10 }
 0x720   :  { %v801_v36 = vsub.f32 %v785_v32, %v754_v34 }
 0x722   :  { %v803_v37 = vsel %vm802_vm13, %v801_v36, 0.0 }
 0x791   :  { %v763_v23 = vpop.xlane.xlu1 %762 }
 0x792   :  { %1043 = vlog2.f32 %v763_v23 }
 0x795   :  { %v748_v33 = vpop.xlane.xlu1 %747 }
 0x79c   :  { %v1044_v28 = vpop.eup %1043 }
 0x79d   :  { %v765_v29 = vmul.f32 0.6931472, %v1044_v28 }
 0x79f   :  { %v766_v31 = vadd.f32 %v765_v29, %v757_v58 }
 0x7a1   :  { %v786_v4 = vsub.f32 %v766_v31, %v748_v33 }
 0x7a3   :  { %v788_v35 = vsel %vm787_vm12, %v786_v4, 0.0 }
 0x7a4   :  { %789 = vadd.xlane.f32.xlu1 %v788_v35 }
 0x7a8   :  { %804 = vadd.xlane.f32.xlu1 %v803_v37 }
 0x7a9   :  { %1056 = shalt.err (!%p1053_p4)
}
 0x7aa   :  { %s1057_s28 = scalar_lea.hbm %s1467_s18, 32 }
 0x7ab   :  { %p1058_p5 = scmp.ne.s32.totalorder %s1467_s18, %s1057_s28  ;;  %p1061_p6 = scmp.lt.u32.totalorder %s1057_s28, %s1467_s18 }
 0x7ad   :  { %p1063_p7 = pnand %p1061_p6, %p1058_p5 }
 0x7af   :  { %1066 = shalt.err (!%p1063_p7)
}
 0x7b0   :  { %841 = dma.vmem_to_hbm [thread:$0]  %s839_s15, 32, %s1467_s18, [#allocation6]  }
 0x7b1   :  { %s1067_s23 = scalar_lea.vmem %s829_s8, 32  ;;  %p1072_p9 = scmp.lt.s32.totalorder %s829_s8, %s829_s8 }
 0x7b2   :  { %p1068_p8 = scmp.ne.s32.totalorder %s829_s8, %s1067_s23  ;;  %p1073_p10 = scmp.lt.s32.totalorder %s1067_s23, %s1067_s23 }
 0x7b4   :  { %p1074_p11 = por %p1073_p10, %p1072_p9 }
 0x7b6   :  { %p1075_p12 = pnand %p1074_p11, %p1068_p8 }
 0x7b8   :  { %1078 = shalt.err (!%p1075_p12)
}
 0x7b9   :  { %s1079_s12 = scalar_lea.hbm %s1466_s17, 32 }
 0x7ba   :  { %p1080_p13 = scmp.ne.s32.totalorder %s1466_s17, %s1079_s12  ;;  %p1083_p0 = scmp.lt.u32.totalorder %s1079_s12, %s1466_s17 }
 0x7bc   :  { %p1085_p1 = pnand %p1083_p0, %p1080_p13 }
 0x7be   :  { %1088 = shalt.err (!%p1085_p1)
}
 0x7bf   :  { %831 = dma.vmem_to_hbm [thread:$0]  %s829_s8, 32, %s1466_s17, [#allocation4]  }
 0x7c0   :  { %s1144_s11 = smov [#allocation7]  }
 0x7c1   :  { %s848_s25 = sshll.u32 %s1144_s11, 4  ;;  %s849_s25 = int_to_ptr.vmem [resolvable:$true] %s848_s25 }
 0x7c2   :  { %s1089_s14 = scalar_lea.vmem %s849_s25, 32  ;;  %p1094_p3 = scmp.lt.s32.totalorder %s849_s25, %s849_s25 }
 0x7c3   :  { %p1090_p2 = scmp.ne.s32.totalorder %s849_s25, %s1089_s14  ;;  %p1095_p4 = scmp.lt.s32.totalorder %s1089_s14, %s1089_s14 }
 0x7c5   :  { %p1096_p5 = por %p1095_p4, %p1094_p3 }
 0x7c7   :  { %p1097_p6 = pnand %p1096_p5, %p1090_p2 }
 0x7c9   :  { %1100 = shalt.err (!%p1097_p6)
}
 0x7ca   :  { %s1101_s15 = scalar_lea.hbm %s1468_s19, 32 }
 0x7cb   :  { %p1102_p7 = scmp.ne.s32.totalorder %s1468_s19, %s1101_s15  ;;  %p1105_p8 = scmp.lt.u32.totalorder %s1101_s15, %s1468_s19 }
 0x7cd   :  { %p1107_p9 = pnand %p1105_p8, %p1102_p7 }
 0x7cf   :  { %1110 = shalt.err (!%p1107_p9)
}
 0x7d0   :  { %851 = dma.vmem_to_hbm [thread:$0]  %s849_s25, 32, %s1468_s19, [#allocation6]   ;;  %vm820_vm14 = vcmask 0  }
 0x7d1   :  { %s1145_s19 = smov [#allocation8]  }
 0x7d2   :  { %s858_s9 = sshll.u32 %s1145_s19, 4  ;;  %s859_s9 = int_to_ptr.vmem [resolvable:$true] %s858_s9 }
 0x7d3   :  { %s1111_s2 = scalar_lea.vmem %s859_s9, 16  ;;  %s1115_s29 = scalar_lea.vmem %s859_s9, 32 }
 0x7d4   :  { %p1112_p10 = scmp.ne.s32.totalorder %s859_s9, %s1111_s2  ;;  %p1116_p11 = scmp.lt.s32.totalorder %s859_s9, %s859_s9 }
 0x7d5   :  { %p1117_p12 = scmp.lt.s32.totalorder %s1115_s29, %s1111_s2 }
 0x7d7   :  { %p1118_p13 = por %p1117_p12, %p1116_p11 }
 0x7d9   :  { %p1119_p0 = pnand %p1118_p13, %p1112_p10 }
 0x831   :  { %v790_v38 = vpop.xlane.xlu1 %789 }
 0x832   :  { %v791_v39 = vrot.slane %v790_v38, 4 }
 0x834   :  { %v792_v40 = vadd.f32 %v791_v39, %v790_v38 }
 0x835   :  { %v805_v41 = vpop.xlane.xlu1 %804 }
 0x836   :  { %v793_v42 = vrot.slane %v792_v40, 2  ;;  %v806_v43 = vrot.slane %v805_v41, 4 }
 0x838   :  { %v807_v44 = vadd.f32 %v806_v43, %v805_v41  ;;  %v794_v45 = vadd.f32 %v793_v42, %v792_v40 }
 0x83a   :  { %v808_v46 = vrot.slane %v807_v44, 2  ;;  %v795_v47 = vrot.slane %v794_v45, 1 }
 0x83c   :  { %v809_v48 = vadd.f32 %v808_v46, %v807_v44  ;;  %v796_v49 = vadd.f32 %v795_v47, %v794_v45 }
 0x83e   :  { %988 = vpush %v796_v49  ;;  %v810_v50 = vrot.slane %v809_v48, 1 }
 0x840   :  { %v811_v51 = vadd.f32 %v810_v50, %v809_v48 }
 0x842   :  { %990 = vpush %v811_v51 }
 0x86f   :  { %s989_s28 = spop %988 }
 0x870   :  { %v798_v52 = vstv %s989_s28 }
 0x871   :  { %v800_v54 = vmul.f32 0.5, %v798_v52 }
 0x873   :  { %s991_s4 = spop %990 }
 0x874   :  { %v813_v53 = vstv %s991_s4 }
 0x875   :  { %v814_v55 = vmul.f32 0.5, %v813_v53 }
 0x877   :  { %v815_v56 = vadd.f32 %v814_v55, %v800_v54 }
 0x879   :  { %v816_v57 = vmul.f32 0.5, %v815_v56 }
 0x87b   :  { %821 = vst.msk [vmem:[#allocation8] sm:$0x1] %vm820_vm14, %v816_v57 }
 0x87c   :  { %1122 = shalt.err (!%p1119_p0)
}
 0x87d   :  { %s1123_s23 = scalar_lea.hbm %s1469_s20, 16 }
 0x87e   :  { %p1124_p1 = scmp.ne.s32.totalorder %s1469_s20, %s1123_s23  ;;  %p1127_p2 = scmp.lt.u32.totalorder %s1123_s23, %s1469_s20 }
 0x880   :  { %p1129_p3 = pnand %p1127_p2, %p1124_p1 }
 0x882   :  { %1132 = shalt.err (!%p1129_p3)
}
 0x883   :  { %861 = dma.vmem_to_hbm [thread:$0]  %s859_s9, 16, %s1469_s20, [#allocation9]  }
 0x884   :  { %1133 = dma.done.wait [#allocation4], 32  }
 0x885   :  { %1134 = vsyncadd [#allocation4], 4294967264 }
 0x886   :  { %1135 = dma.done.wait [#allocation6], 64  }
 0x887   :  { %1136 = vsyncadd [#allocation6], 4294967232 }
 0x888   :  { %1137 = dma.done.wait [#allocation9], 16  }
 0x889   :  { %1138 = vsyncadd [#allocation9], 4294967280 }
 0x88a   :  { %874 = vsyncpa [#allocation4], 1 }
 0x88b   :  { %875 = vsyncpa [#allocation6], 1 }
 0x88c   :  { %876 = vsyncpa [#allocation9], 1 }

</bundles_post_ra>
